<compile_context>
chip_gen: v7x
topology: tpu7x:2x2x1
jax: 0.10.0
libtpu: 0.0.40
codegen_flags: <defaults>
</compile_context>

<pallas_src>
import functools

import jax
import jax.numpy as jnp
from jax.experimental import pallas as pl
from jax.experimental.pallas import tpu as pltpu

EPS = 1e-5  # PyTorch GroupNorm default eps


# ----------------------------------------------------------------------------
# One-time (cached) probe of the pltpu.roll shift convention.
# True  -> matches np.roll (positive shift moves data to higher indices).
# Keeps the conv tap shifts correct across jax versions / lowerings.
# ----------------------------------------------------------------------------
@functools.lru_cache(maxsize=None)
def _roll_like_numpy() -> bool:
    def probe(x_ref, o_ref):
        o_ref[...] = pltpu.roll(x_ref[...], shift=1, axis=1)

    x = jnp.tile(jnp.arange(128, dtype=jnp.float32), (8, 1))
    y = pl.pallas_call(probe,
                       out_shape=jax.ShapeDtypeStruct((8, 128), jnp.float32))(x)
    return bool(jax.device_get(y)[0, 0] == 127.0)


# ----------------------------------------------------------------------------
# In-kernel helpers
# ----------------------------------------------------------------------------
def _conv3x3(x, w9, bias, row, col, H, W, HW, roll_np):
    """3x3 same-padding conv on a channels-on-sublanes (C, HW) f32 tile.

    x    : (C, HW) f32 activations (flattened spatial on the lane axis).
    w9   : (C_out, 9*C_in) bf16; tap t = (dy+1)*3 + (dx+1) occupies columns
           [t*C_in, (t+1)*C_in).
    bias : (C_out, 1) f32.
    row, col : (1, HW) int32 pixel row / column indices.
    Returns (C_out, HW) f32 (f32 MXU accumulation).
    """
    taps = []
    for dy in (-1, 0, 1):
        for dx in (-1, 0, 1):
            d = dy * W + dx                          # flat lane offset of this tap
            if d == 0:
                t = x
            else:
                shift = (-d if roll_np else d) % HW  # out[p] = x[(p + d) mod HW]
                t = pltpu.roll(x, shift=shift, axis=1)
            conds = []
            if dy < 0:
                conds.append(row >= -dy)
            if dy > 0:
                conds.append(row < H - dy)
            if dx < 0:
                conds.append(col >= -dx)
            if dx > 0:
                conds.append(col < W - dx)
            if conds:
                valid = functools.reduce(jnp.logical_and, conds)
                t = jnp.where(valid, t, 0.0)
            taps.append(t)
    taps = jnp.concatenate(taps, axis=0).astype(jnp.bfloat16)      # (9C, HW)
    out = jnp.dot(w9, taps, preferred_element_type=jnp.float32)    # (C, HW) f32
    return out + bias


def _groupnorm_silu(x, gamma, beta, pmat):
    """GroupNorm (two-pass biased variance, eps=1e-5) + affine + SiLU.

    x: (C, HW) f32.  pmat: (C, C) f32 with pmat[i, j] = 1/(cg*HW) if channels
    i, j share a group else 0, so sum_lanes(pmat @ y) is the per-channel group
    mean of y.  gamma / beta: (C, 1) f32.
    """
    mean_c = jnp.sum(jnp.dot(pmat, x, preferred_element_type=jnp.float32),
                     axis=1, keepdims=True)                         # (C, 1)
    cent = x - mean_c                                               # two-pass
    var_c = jnp.sum(jnp.dot(pmat, cent * cent,
                            preferred_element_type=jnp.float32),
                    axis=1, keepdims=True)                          # (C, 1)
    h = cent * jax.lax.rsqrt(jnp.maximum(var_c, 0.0) + EPS)
    h = h * gamma + beta
    return h * jax.nn.sigmoid(h)                                    # SiLU


# ----------------------------------------------------------------------------
# Fused kernel: one grid step per batch element
# ----------------------------------------------------------------------------
def resnet_block_kernel(x_ref, tproj_ref, w1_ref, b1_ref, g1_ref, be1_ref,
                        w2_ref, b2_ref, g2_ref, be2_ref, out_ref,
                        *, H, W, C, G, roll_np):
    HW = H * W
    cg = C // G

    # Constants built once per grid step and reused by both convs / GroupNorms.
    pix = jax.lax.broadcasted_iota(jnp.int32, (1, HW), 1)
    row = pix // W
    col = pix - row * W
    gi = jax.lax.broadcasted_iota(jnp.int32, (C, C), 0) // cg
    gj = jax.lax.broadcasted_iota(jnp.int32, (C, C), 1) // cg
    pmat = (gi == gj).astype(jnp.float32) * (1.0 / float(cg * HW))

    x = x_ref[0].astype(jnp.float32)                    # (C, HW); residual too

    # ---- block1: conv3x3 -> GroupNorm -> SiLU ----
    h = _conv3x3(x, w1_ref[...], b1_ref[...], row, col, H, W, HW, roll_np)
    h = _groupnorm_silu(h, g1_ref[...], be1_ref[...], pmat)

    # ---- time-embedding projection (precomputed in wrapper): broadcast add ----
    h = h + tproj_ref[0]                                # (C, 1) over all pixels

    # ---- block2: conv3x3 -> GroupNorm -> SiLU ----
    h = _conv3x3(h, w2_ref[...], b2_ref[...], row, col, H, W, HW, roll_np)
    h = _groupnorm_silu(h, g2_ref[...], be2_ref[...], pmat)

    # ---- identity residual (change_dim=False) ----
    # TODO(synk): change_dim=True path (1x1 res_conv) not implemented here.
    out_ref[...] = (h + x)[None].astype(out_ref.dtype)


# ----------------------------------------------------------------------------
# Wrapper
# ----------------------------------------------------------------------------
def resnet_block_forward(x_nchw, temb, p, groups=8):
    """ResnetBlock forward.  x_nchw: (B, C, H, W); temb: (B, T)."""
    B, C, H, W = x_nchw.shape
    G = groups
    HW = H * W

    # NCHW already is the kernel's channels-on-sublanes (C, HW) layout: free reshape.
    x = x_nchw.reshape(B, C, HW).astype(jnp.float32)

    # Time-embedding MLP hoisted out of the kernel (batch-level (B,T)@(T,C)).
    te = temb.astype(jnp.float32)
    tproj = (jnp.dot(te * jax.nn.sigmoid(te), p["mw"],
                     precision=jax.lax.Precision.HIGHEST)
             + p["mb"]).reshape(B, C, 1)

    # 3x3 weights: HWIO (3,3,Ci,Co) -> (Co, 9*Ci) bf16, tap-major (matches taps).
    def pack_w(w):
        return jnp.transpose(w, (3, 0, 1, 2)).reshape(C, 9 * C).astype(jnp.bfloat16)

    def colvec(v):
        return jnp.asarray(v, jnp.float32).reshape(C, 1)

    args = (x, tproj,
            pack_w(p["w1"]), colvec(p["b1"]), colvec(p["g1"]), colvec(p["be1"]),
            pack_w(p["w2"]), colvec(p["b2"]), colvec(p["g2"]), colvec(p["be2"]))

    def const2d(shape):
        return pl.BlockSpec(shape, lambda b: (0, 0))

    out = pl.pallas_call(
        functools.partial(resnet_block_kernel, H=H, W=W, C=C, G=G,
                          roll_np=_roll_like_numpy()),
        out_shape=jax.ShapeDtypeStruct((B, C, HW), jnp.float32),
        grid_spec=pltpu.PrefetchScalarGridSpec(
            num_scalar_prefetch=0,
            grid=(B,),
            in_specs=[
                pl.BlockSpec((1, C, HW), lambda b: (b, 0, 0)),   # x (and residual)
                pl.BlockSpec((1, C, 1), lambda b: (b, 0, 0)),    # temb projection
                const2d((C, 9 * C)), const2d((C, 1)), const2d((C, 1)), const2d((C, 1)),
                const2d((C, 9 * C)), const2d((C, 1)), const2d((C, 1)), const2d((C, 1)),
            ],
            out_specs=pl.BlockSpec((1, C, HW), lambda b: (b, 0, 0)),
        ),
        # Footprint ~0.5 MiB (well under v7x's 64 MiB VMEM): no vmem_limit
        # override; default double-buffering of the tiny weight blocks is fine.
        compiler_params=pltpu.CompilerParams(
            dimension_semantics=("parallel",)),
    )(*args)

    return out.reshape(B, C, H, W)


# ----------------------------------------------------------------------------
# Pure-JAX reference (correctness check only)
# ----------------------------------------------------------------------------
def reference_forward(x_nchw, temb, p, groups=8):
    x = jnp.transpose(x_nchw, (0, 2, 3, 1)).astype(jnp.float32)

    def block(h, w, b, gamma, beta):
        y = jax.lax.conv_general_dilated(
            h, w, (1, 1), ((1, 1), (1, 1)),
            dimension_numbers=("NHWC", "HWIO", "NHWC"),
            precision=jax.lax.Precision.HIGHEST)
        y = y + b.reshape(1, 1, 1, -1)
        B, H, W, C = y.shape
        g = groups
        yg = y.reshape(B, H, W, g, C // g)
        mean = yg.mean(axis=(1, 2, 4), keepdims=True)
        var = yg.var(axis=(1, 2, 4), keepdims=True)
        yg = (yg - mean) * jax.lax.rsqrt(var + EPS)
        y = yg.reshape(B, H, W, C) * gamma.reshape(1, 1, 1, -1) + beta.reshape(1, 1, 1, -1)
        return y * jax.nn.sigmoid(y)

    h = block(x, p["w1"], p["b1"], p["g1"], p["be1"])
    t = temb * jax.nn.sigmoid(temb)
    tp = jnp.dot(t, p["mw"], precision=jax.lax.Precision.HIGHEST) + p["mb"]   # (B, C)
    h = h + tp[:, None, None, :]
    h = block(h, p["w2"], p["b2"], p["g2"], p["be2"])
    out = h + x                                      # change_dim=False identity
    return jnp.transpose(out, (0, 3, 1, 2))


# ----------------------------------------------------------------------------
if __name__ == "__main__":
    B, C, H, W, T, G = 2, 32, 16, 16, 64, 8   # out_dim=32, groups=8

    key = jax.random.PRNGKey(0)
    keys = jax.random.split(key, 12)
    x = jax.random.normal(keys[0], (B, C, H, W), jnp.float32)   # NCHW input
    temb = jax.random.normal(keys[1], (B, T), jnp.float32)

    params = {
        "w1": 0.05 * jax.random.normal(keys[2], (3, 3, C, C), jnp.float32),
        "b1": 0.10 * jax.random.normal(keys[3], (1, C), jnp.float32),
        "g1": 1.0 + 0.10 * jax.random.normal(keys[4], (1, C), jnp.float32),
        "be1": 0.10 * jax.random.normal(keys[5], (1, C), jnp.float32),
        "w2": 0.05 * jax.random.normal(keys[6], (3, 3, C, C), jnp.float32),
        "b2": 0.10 * jax.random.normal(keys[7], (1, C), jnp.float32),
        "g2": 1.0 + 0.10 * jax.random.normal(keys[8], (1, C), jnp.float32),
        "be2": 0.10 * jax.random.normal(keys[9], (1, C), jnp.float32),
        "mw": 0.10 * jax.random.normal(keys[10], (T, C), jnp.float32),
        "mb": 0.10 * jax.random.normal(keys[11], (1, C), jnp.float32),
    }

    out = resnet_block_forward(x, temb, params, groups=G)
    out = jax.block_until_ready(out)
    assert out.shape == (B, C, H, W), out.shape

    ref = reference_forward(x, temb, params, groups=G)
    max_err = float(jnp.max(jnp.abs(out - ref)))
    # bf16 MXU operands (f32 accumulation) vs. a full-f32 reference: tolerance
    # loosened accordingly; observed error is ~1e-2 at these magnitudes.
    if max_err > 5e-2:
        raise AssertionError(f"Pallas output mismatch vs reference: {max_err}")

    print("KERNEL_OK")
</pallas_src>

<mosaic_0001>
module attributes {stable_mosaic.version = 11 : i64} {
  func.func @probe(%arg0: memref<8x128xf32, #tpu.memory_space<vmem>>, %arg1: memref<8x128xf32, #tpu.memory_space<vmem>>) attributes {dimension_semantics = [], scalar_prefetch = 0 : i64, scratch_operands = 0 : i64, tpu.core_type = #tpu.core_type<tc>} {
    %c0 = arith.constant 0 : index
    %c0_0 = arith.constant 0 : index
    %0 = vector.load %arg0[%c0, %c0_0] : memref<8x128xf32, #tpu.memory_space<vmem>>, vector<8x128xf32>
    %c1_i32 = arith.constant 1 : i32
    %1 = tpu.dynamic_rotate %0 by %c1_i32 dim 1 : vector<8x128xf32>, i32 -> vector<8x128xf32>
    %c0_1 = arith.constant 0 : index
    %c0_2 = arith.constant 0 : index
    %2 = vector.load %arg1[%c0_1, %c0_2] : memref<8x128xf32, #tpu.memory_space<vmem>>, vector<8x128xf32>
    tpu.vector_store %arg1[%c0_1, %c0_2], %1 {strides = array<i32>} : memref<8x128xf32, #tpu.memory_space<vmem>>, vector<8x128xf32>,
    return
  }
}

</mosaic_0001>

<bundles_post_ra>
// kernel: tpu_custom_call.1
= control target key start
LH: loop header
LB: loop body
LE: loop exit
PB: predicated region body
PF: predicated region fallthrough
CT: control target
= control target key end

     0   :  { %6 = vsyncpa [#allocation3], 0  ;;  %s128_s0 = inlined_call_operand.hbm [shape: f32[8,128], index: 0, kind: input, shape index: {}]   ;;  %s129_s1 = inlined_call_operand.hbm [shape: f32[8,128], index: 1, kind: output, shape index: {}]  }
   0x1   :  { %7 = vsyncpa [#allocation4], 0  ;;  %s91_s6 = smov [#allocation2]   ;;  %s43_s10 = scalar_lea.hbm %s128_s0, 128 }
   0x2   :  { %s14_s7 = sshll.u32 %s91_s6, 4  ;;  %p44_p0 = scmp.ne.s32.totalorder %s128_s0, %s43_s10  ;;  %s15_s7 = int_to_ptr.vmem [resolvable:$true] %s14_s7 }
   0x3   :  { %p47_p1 = scmp.lt.u32.totalorder %s43_s10, %s128_s0 }
   0x5   :  { %p49_p2 = pnand %p47_p1, %p44_p0 }
   0x7   :  { %52 = shalt.err (!%p49_p2)
}
   0x8   :  { %s53_s15 = scalar_lea.vmem %s15_s7, 128  ;;  %p58_p4 = scmp.lt.s32.totalorder %s15_s7, %s15_s7 }
   0x9   :  { %p54_p3 = scmp.ne.s32.totalorder %s15_s7, %s53_s15  ;;  %p59_p5 = scmp.lt.s32.totalorder %s53_s15, %s53_s15 }
   0xb   :  { %p60_p6 = por %p59_p5, %p58_p4 }
   0xd   :  { %p61_p7 = pnand %p60_p6, %p54_p3 }
   0xf   :  { %64 = shalt.err (!%p61_p7)
}
  0x10   :  { %17 = dma.hbm_to_vmem [thread:$0]  %s128_s0, 128, %s15_s7, [#allocation3]  }
  0x11   :  { %87 = dma.done.wait [#allocation3], 128  }
  0x12   :  { %88 = vsyncadd [#allocation3], 4294967168  ;;  %v21_v0 = vld [vmem:[#allocation2] sm:$0xff]  ;;  %s92_s18 = smov 1   ;;  %s93_s19 = smov [#allocation5]  }
  0x13   :  { %22 = vrot.lane.b32.xlu0 %v21_v0, %s92_s18  ;;  %s31_s20 = sshll.u32 %s93_s19, 4  ;;  %s32_s20 = int_to_ptr.vmem [resolvable:$true] %s31_s20 }
  0x14   :  { %s65_s21 = scalar_lea.vmem %s32_s20, 128  ;;  %p70_p9 = scmp.lt.s32.totalorder %s32_s20, %s32_s20 }
  0x15   :  { %p66_p8 = scmp.ne.s32.totalorder %s32_s20, %s65_s21  ;;  %p71_p10 = scmp.lt.s32.totalorder %s65_s21, %s65_s21 }
  0x17   :  { %p72_p11 = por %p71_p10, %p70_p9 }
  0x19   :  { %p73_p12 = pnand %p72_p11, %p66_p8 }
  0x85   :  { %v23_v1 = vpop.permute.xlu0 %22 }
  0x86   :  { %24 = vst [vmem:[#allocation5] sm:$0xff] %v23_v1 }
  0x87   :  { %76 = shalt.err (!%p73_p12)
}
  0x88   :  { %s77_s0 = scalar_lea.hbm %s129_s1, 128 }
  0x89   :  { %p78_p13 = scmp.ne.s32.totalorder %s129_s1, %s77_s0  ;;  %p81_p0 = scmp.lt.u32.totalorder %s77_s0, %s129_s1 }
  0x8b   :  { %p83_p1 = pnand %p81_p0, %p78_p13 }
  0x8d   :  { %86 = shalt.err (!%p83_p1)
}
  0x8e   :  { %34 = dma.vmem_to_hbm [thread:$0]  %s32_s20, 128, %s129_s1, [#allocation4]  }
  0x8f   :  { %89 = dma.done.wait [#allocation4], 128  }
  0x90   :  { %90 = vsyncadd [#allocation4], 4294967168 }
  0x91   :  { %38 = vsyncpa [#allocation3], 1 }
  0x92   :  { %39 = vsyncpa [#allocation4], 1 }

</bundles_post_ra>
